<compile_context>
chip_gen: v7x
topology: tpu7x:2x2x1
jax: 0.10.0
libtpu: 0.0.40
codegen_flags: <defaults>
</compile_context>

<pallas_src>
import math
import random

import jax
import jax.numpy as jnp
from jax.experimental import pallas as pl
from jax.experimental.pallas import tpu as pltpu


# Burn colors are deterministic per level (_create_burn_color applied to the
# fixed burn_levels [0.25, 0.5, 0.75, 1.0]).
_BURN_LEVELS = (0.25, 0.5, 0.75, 1.0)
_BURN_COLORS = (
    (0.65, 0.40, 0.25),  # level 0.25  (0.2 <= level < 0.5)
    (0.35, 0.20, 0.15),  # level 0.5   (0.5 <= level < 0.8)
    (0.35, 0.20, 0.15),  # level 0.75  (0.5 <= level < 0.8)
    (0.15, 0.10, 0.10),  # level 1.0   (>= 0.8)
)
_CHARRED_COLOR = (0.05, 0.05, 0.05)


# --------------------------------------------------------------------------
# Pallas kernel: the per-pixel blend cascade of forward()
# --------------------------------------------------------------------------
def _make_burn_blend_kernel(num_channels, burn_intensity, apply_texture):
    """Builds the blend kernel.

    All scalars (intensity, colors, blend factors) are Python floats closed
    over at trace time -> they lower to splat constants, never to captured
    array constants.
    """

    def kernel(*refs):
        if apply_texture:
            img_ref, mask_ref, noise_ref, out_ref = refs
        else:
            img_ref, mask_ref, out_ref = refs
            noise_ref = None

        # Dense (tile_r, lw) mask tile; thresholds computed ONCE, shared by
        # all channels.
        m = mask_ref[0].astype(jnp.float32) * burn_intensity
        level_masks = [jnp.logical_and(m > lvl * 0.8, m <= lvl)
                       for lvl in _BURN_LEVELS]
        charred_mask = m > 0.8
        if apply_texture:
            tex_mask = m > 0.3
            noise_fac = 1.0 + noise_ref[0].astype(jnp.float32) * 0.05

        # Channel-unrolled: scalar color splats, dense (tile_r, lw) slabs.
        for ch in range(num_channels):
            x = img_ref[ch].astype(jnp.float32)              # (tile_r, lw)
            r = x
            for lvl, color, lm in zip(_BURN_LEVELS, _BURN_COLORS, level_masks):
                blend = lvl * burn_intensity                  # Python float
                burned = x * (1.0 - blend) + (color[ch] * blend)
                r = jnp.where(lm, burned, r)
            r = jnp.where(charred_mask, _CHARRED_COLOR[ch], r)
            if apply_texture:
                r = jnp.where(tex_mask, r * noise_fac, r)
            out_ref[ch] = jnp.clip(r, 0.0, 1.0).astype(out_ref.dtype)

    return kernel


def pizza_burning_blend(img, burn_mask_2d, texture_noise, burn_intensity,
                        apply_texture):
    """Applies the burn-blend cascade of PizzaBurningEffect.forward.

    `burn_intensity` must be a Python float; `apply_texture` a Python bool
    (they come from the host-level random draws in the module, matching the
    PyTorch reference). Safe to call inside jax.jit.
    """
    c, h, w = img.shape
    assert c == 3, "PizzaBurningEffect assumes RGB (3-channel) images"
    n = h * w
    burn_intensity = float(burn_intensity)
    apply_texture = bool(apply_texture) and (texture_noise is not None)

    # Lane width: multiple of 128, as wide as evenly divides the image so the
    # common case needs no padding at all.
    if n % 512 == 0:
        lw = 512
    elif n % 256 == 0:
        lw = 256
    else:
        lw = 128
    n_pad = pl.cdiv(n, lw) * lw
    pad = n_pad - n

    img_f = img.reshape(c, n)
    mask_f = burn_mask_2d.reshape(1, n)
    if pad:  # only when H*W is not a multiple of 128 (rare)
        img_f = jnp.pad(img_f, ((0, 0), (0, pad)))
        mask_f = jnp.pad(mask_f, ((0, 0), (0, pad)))

    rows = n_pad // lw
    img_3d = img_f.reshape(c, rows, lw)
    mask_3d = mask_f.reshape(1, rows, lw)

    # Tile sizing: ~2 MiB of image bytes per block (f32 compute), row count a
    # multiple of 8; tiny inputs keep a single grid step (no forced split on
    # 1-TC chips). Ragged trailing blocks are handled by the cdiv grid.
    max_rows = max(8, (2 * 1024 * 1024) // (c * lw * 4))
    if rows <= max_rows:
        tile_r = rows
    else:
        tile_r = (max_rows // 8) * 8
    grid = (pl.cdiv(rows, tile_r),)

    img_spec = pl.BlockSpec((c, tile_r, lw), lambda i: (0, i, 0))
    row_spec = pl.BlockSpec((1, tile_r, lw), lambda i: (0, i, 0))

    in_specs = [img_spec, row_spec]
    args = [img_3d, mask_3d]
    if apply_texture:
        noise_f = texture_noise.reshape(1, n)
        if pad:
            noise_f = jnp.pad(noise_f, ((0, 0), (0, pad)))
        in_specs.append(row_spec)
        args.append(noise_f.reshape(1, rows, lw))

    kernel = _make_burn_blend_kernel(c, burn_intensity, apply_texture)

    out = pl.pallas_call(
        kernel,
        out_shape=jax.ShapeDtypeStruct((c, rows, lw), img.dtype),
        grid_spec=pltpu.PrefetchScalarGridSpec(
            num_scalar_prefetch=0,
            grid=grid,
            in_specs=in_specs,
            out_specs=img_spec,
        ),
        compiler_params=pltpu.CompilerParams(
            dimension_semantics=("parallel",),
            vmem_limit_bytes=32 * 1024 * 1024),
    )(*args)

    out = out.reshape(c, n_pad)
    if pad:
        out = out[:, :n]
    return out.reshape(c, h, w)


# --------------------------------------------------------------------------
# Burn-mask construction (plain-JAX glue, deterministic randomness)
# --------------------------------------------------------------------------
def _coords(h, w):
    y = jnp.linspace(-1.0, 1.0, h, dtype=jnp.float32)
    x = jnp.linspace(-1.0, 1.0, w, dtype=jnp.float32)
    y_coords, x_coords = jnp.meshgrid(y, x, indexing="ij")
    return y_coords, x_coords


def _edge_burn_mask(h, w, rng, key):
    y_coords, x_coords = _coords(h, w)
    dist = jnp.sqrt(x_coords ** 2 + y_coords ** 2)
    noise = jax.random.normal(key, (h, w), dtype=jnp.float32) * 0.05
    dist = dist + noise
    threshold = rng.uniform(0.6, 0.8)
    edge_weight = jnp.exp(3.0 * (dist - threshold))
    edge_weight = (edge_weight - edge_weight.min()) / (
        edge_weight.max() - edge_weight.min())
    if rng.random() < 0.3:
        side = rng.choice(["left", "right", "top", "bottom"])
        if side == "left":
            side_mask = x_coords < -0.3
        elif side == "right":
            side_mask = x_coords > 0.3
        elif side == "top":
            side_mask = y_coords < -0.3
        else:
            side_mask = y_coords > 0.3
        edge_weight = jnp.where(
            side_mask, edge_weight * rng.uniform(1.2, 1.5), edge_weight)
    return edge_weight


def _spot_burn_mask(h, w, rng):
    y_coords, x_coords = _coords(h, w)
    spots_mask = jnp.zeros((h, w), dtype=jnp.float32)
    num_spots = rng.randint(3, 10)
    for _ in range(num_spots):
        r = rng.uniform(0.3, 1.0)
        theta = rng.uniform(0.0, 2.0 * math.pi)
        spot_x = r * math.cos(theta)
        spot_y = r * math.sin(theta)
        if rng.random() < 0.3:
            x_scale = rng.uniform(0.5, 1.5)
            y_scale = rng.uniform(0.5, 1.5)
            spot_dist = jnp.sqrt(((x_coords - spot_x) / x_scale) ** 2
                                 + ((y_coords - spot_y) / y_scale) ** 2)
        else:
            spot_dist = jnp.sqrt((x_coords - spot_x) ** 2
                                 + (y_coords - spot_y) ** 2)
        spot_radius = rng.uniform(0.05, 0.25)
        spot_intensity = rng.uniform(0.6, 1.0)
        spot_falloff = rng.uniform(1.0, 3.0)
        if rng.random() < 0.5:
            spot_mask = jnp.exp(-spot_dist * spot_falloff / spot_radius) * spot_intensity
        else:
            normalized_dist = spot_dist / spot_radius
            spot_mask = jnp.maximum(
                jnp.zeros_like(normalized_dist),
                1.0 - normalized_dist ** 2) * spot_intensity
        spots_mask = jnp.maximum(spots_mask, spot_mask)
    return spots_mask


def _streak_burn_mask(h, w, rng, keys):
    y_coords, x_coords = _coords(h, w)
    streaks_mask = jnp.zeros((h, w), dtype=jnp.float32)
    num_streaks = rng.randint(1, 4)
    for i in range(num_streaks):
        theta = rng.uniform(0.0, math.pi)
        rho = rng.uniform(-0.8, 0.8)
        dist_to_line = jnp.abs(
            x_coords * math.cos(theta) + y_coords * math.sin(theta) - rho)
        streak_width = rng.uniform(0.05, 0.15)
        streak_intensity = rng.uniform(0.7, 1.0)
        streak_mask = jnp.exp(
            -dist_to_line ** 2 / (2.0 * streak_width ** 2)) * streak_intensity
        noise = jax.random.normal(keys[i], (h, w), dtype=jnp.float32) * 0.03
        streak_mask = streak_mask * (1.0 + noise)
        streaks_mask = jnp.maximum(streaks_mask, streak_mask)
    return streaks_mask


def _random_burn_mask(h, w, rng, keys):
    edge_w = rng.uniform(0.3, 1.0) if rng.random() < 0.8 else 0.0
    spot_w = rng.uniform(0.5, 1.0)
    streak_w = rng.uniform(0.2, 0.8) if rng.random() < 0.4 else 0.0
    mask = jnp.zeros((h, w), dtype=jnp.float32)
    if edge_w > 0:
        mask = jnp.maximum(mask, _edge_burn_mask(h, w, rng, keys[0]) * edge_w)
    if spot_w > 0:
        mask = jnp.maximum(mask, _spot_burn_mask(h, w, rng) * spot_w)
    if streak_w > 0:
        mask = jnp.maximum(mask, _streak_burn_mask(h, w, rng, keys[1:5]) * streak_w)
    mask_max = mask.max()
    mask = jnp.where(mask_max > 0, mask / jnp.maximum(mask_max, 1e-12), mask)
    return mask


# --------------------------------------------------------------------------
# Module-equivalent wrapper
# --------------------------------------------------------------------------
def pizza_burning_effect(img, *, burn_intensity_min=0.2, burn_intensity_max=0.8,
                         burn_pattern="random", seed=0):
    """JAX/Pallas equivalent of PizzaBurningEffect.forward (deterministic seed).

    Host-level randomness (pattern structure, intensity, texture on/off) is
    drawn at trace time; the full array graph (mask construction + Pallas
    blend) compiles as one jit dispatch (no host sync anywhere).
    """
    _, h, w = img.shape
    rng = random.Random(seed)                               # host random draws
    keys = jax.random.split(jax.random.PRNGKey(seed), 8)    # array-noise draws

    def graph(img_arr, key_arr):
        if burn_pattern == "edge":
            burn_mask_2d = _edge_burn_mask(h, w, rng, key_arr[0])
        elif burn_pattern == "spot":
            burn_mask_2d = _spot_burn_mask(h, w, rng)
        elif burn_pattern == "streak":
            burn_mask_2d = _streak_burn_mask(h, w, rng, key_arr[1:5])
        else:
            burn_mask_2d = _random_burn_mask(h, w, rng, key_arr)

        burn_intensity = rng.uniform(burn_intensity_min, burn_intensity_max)
        apply_texture = rng.random() < 0.7
        texture_noise = None
        if apply_texture:
            # raw N(0,1); the 0.05 scale is applied inside the kernel
            texture_noise = jax.random.normal(key_arr[5], (h, w), dtype=jnp.float32)

        return pizza_burning_blend(img_arr, burn_mask_2d, texture_noise,
                                   burn_intensity, apply_texture)

    # Fresh jit per call: the rng-derived structure is baked in at trace time,
    # so there is no cross-call cache aliasing, and the ~30 mask-construction
    # passes fuse with the blend kernel into a single dispatch.
    return jax.jit(graph)(img, keys)


# --------------------------------------------------------------------------
# Pure-JAX reference of the blend cascade (for correctness checking)
# --------------------------------------------------------------------------
def _blend_reference(img, mask2d, noise, burn_intensity, apply_texture):
    imgf = img.astype(jnp.float32)
    m = mask2d.astype(jnp.float32) * burn_intensity
    result = imgf
    for lvl, color in zip(_BURN_LEVELS, _BURN_COLORS):
        lm = (m > lvl * 0.8) & (m <= lvl)
        blend = lvl * burn_intensity
        col = jnp.asarray(color, jnp.float32).reshape(3, 1, 1)
        result = jnp.where(lm[None], imgf * (1.0 - blend) + col * blend, result)
    charred = jnp.asarray(_CHARRED_COLOR, jnp.float32).reshape(3, 1, 1)
    result = jnp.where((m > 0.8)[None], charred, result)
    if apply_texture:
        fac = (1.0 + 0.05 * noise.astype(jnp.float32))[None]
        result = jnp.where((m > 0.3)[None], result * fac, result)
    return jnp.clip(result, 0.0, 1.0).astype(img.dtype)


if __name__ == "__main__":
    key = jax.random.PRNGKey(0)
    C, H, W = 3, 64, 64                     # RGB image, small spatial size
    k_img, k_mask, k_noise = jax.random.split(key, 3)
    img = jax.random.uniform(k_img, (C, H, W), dtype=jnp.float32)

    # 1) Kernel vs. pure-JAX reference (texture on, all burn levels exercised).
    mask = jax.random.uniform(k_mask, (H, W), dtype=jnp.float32)
    noise = jax.random.normal(k_noise, (H, W), dtype=jnp.float32)
    got = pizza_burning_blend(img, mask, noise, 0.95, True)
    want = _blend_reference(img, mask, noise, 0.95, True)
    got, want = jax.block_until_ready((got, want))
    assert got.shape == want.shape and got.dtype == want.dtype
    assert bool(jnp.allclose(got, want, atol=1e-5))

    # 2) Ragged spatial size (H*W not a multiple of 128), no texture path.
    img2 = jax.random.uniform(k_img, (3, 50, 70), dtype=jnp.float32)
    mask2 = jax.random.uniform(k_mask, (50, 70), dtype=jnp.float32)
    got2 = pizza_burning_blend(img2, mask2, None, 0.6, False)
    want2 = _blend_reference(img2, mask2, None, 0.6, False)
    got2, want2 = jax.block_until_ready((got2, want2))
    assert bool(jnp.allclose(got2, want2, atol=1e-5))

    # 3) Full module-equivalent forward (mask construction + blend, one jit).
    out = pizza_burning_effect(img, seed=0)
    out = jax.block_until_ready(out)
    assert out.shape == (C, H, W)
    assert out.dtype == jnp.float32
    assert bool(jnp.all(jnp.isfinite(out)))
    assert bool(jnp.all((out >= 0.0) & (out <= 1.0)))
    print("KERNEL_OK")
</pallas_src>

<mosaic_0001>
module attributes {stable_mosaic.version = 11 : i64} {
  func.func @kernel(%arg0: i32, %arg1: memref<3x8x512xf32, #tpu.memory_space<vmem>>, %arg2: memref<1x8x512xf32, #tpu.memory_space<vmem>>, %arg3: memref<1x8x512xf32, #tpu.memory_space<vmem>>, %arg4: memref<3x8x512xf32, #tpu.memory_space<vmem>>) attributes {dimension_semantics = [#tpu.dimension_semantics<parallel>], iteration_bounds = array<i64: 1>, scalar_prefetch = 0 : i64, scratch_operands = 0 : i64, tpu.core_type = #tpu.core_type<tc>, window_params = [{transform_indices = @transform_0, window_bounds = array<i64: 3, 8, 512>}, {transform_indices = @transform_1, window_bounds = array<i64: 1, 8, 512>}, {transform_indices = @transform_2, window_bounds = array<i64: 1, 8, 512>}, {transform_indices = @transform_3, window_bounds = array<i64: 3, 8, 512>}]} {
    %c0 = arith.constant 0 : index
    %c0_0 = arith.constant 0 : index
    %c0_1 = arith.constant 0 : index
    %0 = vector.load %arg2[%c0, %c0_0, %c0_1] : memref<1x8x512xf32, #tpu.memory_space<vmem>>, vector<1x8x512xf32>
    %1 = vector.shape_cast %0 : vector<1x8x512xf32> to vector<8x512xf32>
    %cst = arith.constant 0.949999988 : f32
    %2 = vector.broadcast %cst : f32 to vector<8x512xf32>
    %3 = arith.mulf %1, %2 : vector<8x512xf32>
    %cst_2 = arith.constant 2.000000e-01 : f32
    %4 = vector.broadcast %cst_2 : f32 to vector<8x512xf32>
    %5 = arith.cmpf ogt, %3, %4 : vector<8x512xf32>
    %cst_3 = arith.constant 2.500000e-01 : f32
    %6 = vector.broadcast %cst_3 : f32 to vector<8x512xf32>
    %7 = arith.cmpf ole, %3, %6 : vector<8x512xf32>
    %8 = arith.andi %5, %7 : vector<8x512xi1>
    %cst_4 = arith.constant 4.000000e-01 : f32
    %9 = vector.broadcast %cst_4 : f32 to vector<8x512xf32>
    %10 = arith.cmpf ogt, %3, %9 : vector<8x512xf32>
    %cst_5 = arith.constant 5.000000e-01 : f32
    %11 = vector.broadcast %cst_5 : f32 to vector<8x512xf32>
    %12 = arith.cmpf ole, %3, %11 : vector<8x512xf32>
    %13 = arith.andi %10, %12 : vector<8x512xi1>
    %cst_6 = arith.constant 6.000000e-01 : f32
    %14 = vector.broadcast %cst_6 : f32 to vector<8x512xf32>
    %15 = arith.cmpf ogt, %3, %14 : vector<8x512xf32>
    %cst_7 = arith.constant 7.500000e-01 : f32
    %16 = vector.broadcast %cst_7 : f32 to vector<8x512xf32>
    %17 = arith.cmpf ole, %3, %16 : vector<8x512xf32>
    %18 = arith.andi %15, %17 : vector<8x512xi1>
    %cst_8 = arith.constant 8.000000e-01 : f32
    %19 = vector.broadcast %cst_8 : f32 to vector<8x512xf32>
    %20 = arith.cmpf ogt, %3, %19 : vector<8x512xf32>
    %cst_9 = arith.constant 1.000000e+00 : f32
    %21 = vector.broadcast %cst_9 : f32 to vector<8x512xf32>
    %22 = arith.cmpf ole, %3, %21 : vector<8x512xf32>
    %23 = arith.andi %20, %22 : vector<8x512xi1>
    %cst_10 = arith.constant 8.000000e-01 : f32
    %24 = vector.broadcast %cst_10 : f32 to vector<8x512xf32>
    %25 = arith.cmpf ogt, %3, %24 : vector<8x512xf32>
    %cst_11 = arith.constant 3.000000e-01 : f32
    %26 = vector.broadcast %cst_11 : f32 to vector<8x512xf32>
    %27 = arith.cmpf ogt, %3, %26 : vector<8x512xf32>
    %c0_12 = arith.constant 0 : index
    %c0_13 = arith.constant 0 : index
    %c0_14 = arith.constant 0 : index
    %28 = vector.load %arg3[%c0_12, %c0_13, %c0_14] : memref<1x8x512xf32, #tpu.memory_space<vmem>>, vector<1x8x512xf32>
    %29 = vector.shape_cast %28 : vector<1x8x512xf32> to vector<8x512xf32>
    %cst_15 = arith.constant 5.000000e-02 : f32
    %30 = vector.broadcast %cst_15 : f32 to vector<8x512xf32>
    %31 = arith.mulf %29, %30 : vector<8x512xf32>
    %cst_16 = arith.constant 1.000000e+00 : f32
    %32 = vector.broadcast %cst_16 : f32 to vector<8x512xf32>
    %33 = arith.addf %32, %31 : vector<8x512xf32>
    %c0_17 = arith.constant 0 : index
    %c0_18 = arith.constant 0 : index
    %c0_19 = arith.constant 0 : index
    %34 = vector.load %arg1[%c0_17, %c0_18, %c0_19] : memref<3x8x512xf32, #tpu.memory_space<vmem>>, vector<1x8x512xf32>
    %35 = vector.shape_cast %34 : vector<1x8x512xf32> to vector<8x512xf32>
    %cst_20 = arith.constant 0.762499988 : f32
    %36 = vector.broadcast %cst_20 : f32 to vector<8x512xf32>
    %37 = arith.mulf %35, %36 : vector<8x512xf32>
    %cst_21 = arith.constant 1.543750e-01 : f32
    %38 = vector.broadcast %cst_21 : f32 to vector<8x512xf32>
    %39 = arith.addf %37, %38 : vector<8x512xf32>
    %40 = arith.select %8, %39, %35 : vector<8x512xi1>, vector<8x512xf32>
    %cst_22 = arith.constant 5.250000e-01 : f32
    %41 = vector.broadcast %cst_22 : f32 to vector<8x512xf32>
    %42 = arith.mulf %35, %41 : vector<8x512xf32>
    %cst_23 = arith.constant 1.662500e-01 : f32
    %43 = vector.broadcast %cst_23 : f32 to vector<8x512xf32>
    %44 = arith.addf %42, %43 : vector<8x512xf32>
    %45 = arith.select %13, %44, %40 : vector<8x512xi1>, vector<8x512xf32>
    %cst_24 = arith.constant 2.875000e-01 : f32
    %46 = vector.broadcast %cst_24 : f32 to vector<8x512xf32>
    %47 = arith.mulf %35, %46 : vector<8x512xf32>
    %cst_25 = arith.constant 2.493750e-01 : f32
    %48 = vector.broadcast %cst_25 : f32 to vector<8x512xf32>
    %49 = arith.addf %47, %48 : vector<8x512xf32>
    %50 = arith.select %18, %49, %45 : vector<8x512xi1>, vector<8x512xf32>
    %cst_26 = arith.constant 5.000000e-02 : f32
    %51 = vector.broadcast %cst_26 : f32 to vector<8x512xf32>
    %52 = arith.mulf %35, %51 : vector<8x512xf32>
    %cst_27 = arith.constant 1.425000e-01 : f32
    %53 = vector.broadcast %cst_27 : f32 to vector<8x512xf32>
    %54 = arith.addf %52, %53 : vector<8x512xf32>
    %55 = arith.select %23, %54, %50 : vector<8x512xi1>, vector<8x512xf32>
    %cst_28 = arith.constant 5.000000e-02 : f32
    %56 = vector.broadcast %cst_28 : f32 to vector<8x512xf32>
    %57 = arith.select %25, %56, %55 : vector<8x512xi1>, vector<8x512xf32>
    %58 = arith.mulf %57, %33 : vector<8x512xf32>
    %59 = arith.select %27, %58, %57 : vector<8x512xi1>, vector<8x512xf32>
    %cst_29 = arith.constant 0.000000e+00 : f32
    %cst_30 = arith.constant 1.000000e+00 : f32
    %60 = vector.broadcast %cst_29 : f32 to vector<8x512xf32>
    %61 = arith.maximumf %60, %59 : vector<8x512xf32>
    %62 = vector.broadcast %cst_30 : f32 to vector<8x512xf32>
    %63 = arith.minimumf %62, %61 : vector<8x512xf32>
    %c0_31 = arith.constant 0 : index
    %c0_32 = arith.constant 0 : index
    %c0_33 = arith.constant 0 : index
    %64 = vector.load %arg4[%c0_31, %c0_32, %c0_33] : memref<3x8x512xf32, #tpu.memory_space<vmem>>, vector<1x8x512xf32>
    %65 = vector.shape_cast %64 : vector<1x8x512xf32> to vector<8x512xf32>
    %66 = vector.shape_cast %63 : vector<8x512xf32> to vector<1x8x512xf32>
    tpu.vector_store %arg4[%c0_31, %c0_32, %c0_33], %66 {strides = array<i32>} : memref<3x8x512xf32, #tpu.memory_space<vmem>>, vector<1x8x512xf32>,
    %c1 = arith.constant 1 : index
    %c0_34 = arith.constant 0 : index
    %c0_35 = arith.constant 0 : index
    %67 = vector.load %arg1[%c1, %c0_34, %c0_35] : memref<3x8x512xf32, #tpu.memory_space<vmem>>, vector<1x8x512xf32>
    %68 = vector.shape_cast %67 : vector<1x8x512xf32> to vector<8x512xf32>
    %cst_36 = arith.constant 0.762499988 : f32
    %69 = vector.broadcast %cst_36 : f32 to vector<8x512xf32>
    %70 = arith.mulf %68, %69 : vector<8x512xf32>
    %cst_37 = arith.constant 0.0949999988 : f32
    %71 = vector.broadcast %cst_37 : f32 to vector<8x512xf32>
    %72 = arith.addf %70, %71 : vector<8x512xf32>
    %73 = arith.select %8, %72, %68 : vector<8x512xi1>, vector<8x512xf32>
    %cst_38 = arith.constant 5.250000e-01 : f32
    %74 = vector.broadcast %cst_38 : f32 to vector<8x512xf32>
    %75 = arith.mulf %68, %74 : vector<8x512xf32>
    %cst_39 = arith.constant 0.0949999988 : f32
    %76 = vector.broadcast %cst_39 : f32 to vector<8x512xf32>
    %77 = arith.addf %75, %76 : vector<8x512xf32>
    %78 = arith.select %13, %77, %73 : vector<8x512xi1>, vector<8x512xf32>
    %cst_40 = arith.constant 2.875000e-01 : f32
    %79 = vector.broadcast %cst_40 : f32 to vector<8x512xf32>
    %80 = arith.mulf %68, %79 : vector<8x512xf32>
    %cst_41 = arith.constant 1.425000e-01 : f32
    %81 = vector.broadcast %cst_41 : f32 to vector<8x512xf32>
    %82 = arith.addf %80, %81 : vector<8x512xf32>
    %83 = arith.select %18, %82, %78 : vector<8x512xi1>, vector<8x512xf32>
    %cst_42 = arith.constant 5.000000e-02 : f32
    %84 = vector.broadcast %cst_42 : f32 to vector<8x512xf32>
    %85 = arith.mulf %68, %84 : vector<8x512xf32>
    %cst_43 = arith.constant 0.0949999988 : f32
    %86 = vector.broadcast %cst_43 : f32 to vector<8x512xf32>
    %87 = arith.addf %85, %86 : vector<8x512xf32>
    %88 = arith.select %23, %87, %83 : vector<8x512xi1>, vector<8x512xf32>
    %cst_44 = arith.constant 5.000000e-02 : f32
    %89 = vector.broadcast %cst_44 : f32 to vector<8x512xf32>
    %90 = arith.select %25, %89, %88 : vector<8x512xi1>, vector<8x512xf32>
    %91 = arith.mulf %90, %33 : vector<8x512xf32>
    %92 = arith.select %27, %91, %90 : vector<8x512xi1>, vector<8x512xf32>
    %cst_45 = arith.constant 0.000000e+00 : f32
    %cst_46 = arith.constant 1.000000e+00 : f32
    %93 = vector.broadcast %cst_45 : f32 to vector<8x512xf32>
    %94 = arith.maximumf %93, %92 : vector<8x512xf32>
    %95 = vector.broadcast %cst_46 : f32 to vector<8x512xf32>
    %96 = arith.minimumf %95, %94 : vector<8x512xf32>
    %c1_47 = arith.constant 1 : index
    %c0_48 = arith.constant 0 : index
    %c0_49 = arith.constant 0 : index
    %97 = vector.load %arg4[%c1_47, %c0_48, %c0_49] : memref<3x8x512xf32, #tpu.memory_space<vmem>>, vector<1x8x512xf32>
    %98 = vector.shape_cast %97 : vector<1x8x512xf32> to vector<8x512xf32>
    %99 = vector.shape_cast %96 : vector<8x512xf32> to vector<1x8x512xf32>
    tpu.vector_store %arg4[%c1_47, %c0_48, %c0_49], %99 {strides = array<i32>} : memref<3x8x512xf32, #tpu.memory_space<vmem>>, vector<1x8x512xf32>,
    %c2 = arith.constant 2 : index
    %c0_50 = arith.constant 0 : index
    %c0_51 = arith.constant 0 : index
    %100 = vector.load %arg1[%c2, %c0_50, %c0_51] : memref<3x8x512xf32, #tpu.memory_space<vmem>>, vector<1x8x512xf32>
    %101 = vector.shape_cast %100 : vector<1x8x512xf32> to vector<8x512xf32>
    %cst_52 = arith.constant 0.762499988 : f32
    %102 = vector.broadcast %cst_52 : f32 to vector<8x512xf32>
    %103 = arith.mulf %101, %102 : vector<8x512xf32>
    %cst_53 = arith.constant 5.937500e-02 : f32
    %104 = vector.broadcast %cst_53 : f32 to vector<8x512xf32>
    %105 = arith.addf %103, %104 : vector<8x512xf32>
    %106 = arith.select %8, %105, %101 : vector<8x512xi1>, vector<8x512xf32>
    %cst_54 = arith.constant 5.250000e-01 : f32
    %107 = vector.broadcast %cst_54 : f32 to vector<8x512xf32>
    %108 = arith.mulf %101, %107 : vector<8x512xf32>
    %cst_55 = arith.constant 7.125000e-02 : f32
    %109 = vector.broadcast %cst_55 : f32 to vector<8x512xf32>
    %110 = arith.addf %108, %109 : vector<8x512xf32>
    %111 = arith.select %13, %110, %106 : vector<8x512xi1>, vector<8x512xf32>
    %cst_56 = arith.constant 2.875000e-01 : f32
    %112 = vector.broadcast %cst_56 : f32 to vector<8x512xf32>
    %113 = arith.mulf %101, %112 : vector<8x512xf32>
    %cst_57 = arith.constant 1.068750e-01 : f32
    %114 = vector.broadcast %cst_57 : f32 to vector<8x512xf32>
    %115 = arith.addf %113, %114 : vector<8x512xf32>
    %116 = arith.select %18, %115, %111 : vector<8x512xi1>, vector<8x512xf32>
    %cst_58 = arith.constant 5.000000e-02 : f32
    %117 = vector.broadcast %cst_58 : f32 to vector<8x512xf32>
    %118 = arith.mulf %101, %117 : vector<8x512xf32>
    %cst_59 = arith.constant 0.0949999988 : f32
    %119 = vector.broadcast %cst_59 : f32 to vector<8x512xf32>
    %120 = arith.addf %118, %119 : vector<8x512xf32>
    %121 = arith.select %23, %120, %116 : vector<8x512xi1>, vector<8x512xf32>
    %cst_60 = arith.constant 5.000000e-02 : f32
    %122 = vector.broadcast %cst_60 : f32 to vector<8x512xf32>
    %123 = arith.select %25, %122, %121 : vector<8x512xi1>, vector<8x512xf32>
    %124 = arith.mulf %123, %33 : vector<8x512xf32>
    %125 = arith.select %27, %124, %123 : vector<8x512xi1>, vector<8x512xf32>
    %cst_61 = arith.constant 0.000000e+00 : f32
    %cst_62 = arith.constant 1.000000e+00 : f32
    %126 = vector.broadcast %cst_61 : f32 to vector<8x512xf32>
    %127 = arith.maximumf %126, %125 : vector<8x512xf32>
    %128 = vector.broadcast %cst_62 : f32 to vector<8x512xf32>
    %129 = arith.minimumf %128, %127 : vector<8x512xf32>
    %c2_63 = arith.constant 2 : index
    %c0_64 = arith.constant 0 : index
    %c0_65 = arith.constant 0 : index
    %130 = vector.load %arg4[%c2_63, %c0_64, %c0_65] : memref<3x8x512xf32, #tpu.memory_space<vmem>>, vector<1x8x512xf32>
    %131 = vector.shape_cast %130 : vector<1x8x512xf32> to vector<8x512xf32>
    %132 = vector.shape_cast %129 : vector<8x512xf32> to vector<1x8x512xf32>
    tpu.vector_store %arg4[%c2_63, %c0_64, %c0_65], %132 {strides = array<i32>} : memref<3x8x512xf32, #tpu.memory_space<vmem>>, vector<1x8x512xf32>,
    return
  }
  func.func @transform_0(%arg0: i32) -> (i32, i32, i32) {
    %c0_i32 = arith.constant 0 : i32
    %c0_i32_0 = arith.constant 0 : i32
    %c0_i32_1 = arith.constant 0 : i32
    return %c0_i32, %arg0, %c0_i32_0 : i32, i32, i32
  }
  func.func @transform_1(%arg0: i32) -> (i32, i32, i32) {
    %c0_i32 = arith.constant 0 : i32
    %c0_i32_0 = arith.constant 0 : i32
    %c0_i32_1 = arith.constant 0 : i32
    return %c0_i32, %arg0, %c0_i32_0 : i32, i32, i32
  }
  func.func @transform_2(%arg0: i32) -> (i32, i32, i32) {
    %c0_i32 = arith.constant 0 : i32
    %c0_i32_0 = arith.constant 0 : i32
    %c0_i32_1 = arith.constant 0 : i32
    return %c0_i32, %arg0, %c0_i32_0 : i32, i32, i32
  }
  func.func @transform_3(%arg0: i32) -> (i32, i32, i32) {
    %c0_i32 = arith.constant 0 : i32
    %c0_i32_0 = arith.constant 0 : i32
    %c0_i32_1 = arith.constant 0 : i32
    return %c0_i32, %arg0, %c0_i32_0 : i32, i32, i32
  }
}

</mosaic_0001>

<bundles_post_ra>
// kernel: tpu_custom_call.1
= control target key start
LH: loop header
LB: loop body
LE: loop exit
PB: predicated region body
PF: predicated region fallthrough
CT: control target
= control target key end

     0   :  { %8 = vsyncpa [#allocation3], 0  ;;  %s865_s0 = inlined_call_operand.hbm [shape: f32[3,8,512], index: 0, kind: input, shape index: {}]   ;;  %s866_s1 = inlined_call_operand.hbm [shape: f32[1,8,512], index: 1, kind: input, shape index: {}]   ;;  %s867_s2 = inlined_call_operand.hbm [shape: f32[1,8,512], index: 2, kind: input, shape index: {}]   ;;  %s868_s3 = inlined_call_operand.hbm [shape: f32[3,8,512], index: 3, kind: output, shape index: {}]  }
   0x1   :  { %9 = vsyncpa [#allocation6], 0 }
   0x2   :  { %10 = vsyncpa [#allocation4], 0  ;;  %s474_s12 = smov [#allocation5]   ;;  %s475_s14 = smov [#allocation2]  }
   0x3   :  { %s29_s13 = sshll.u32 %s474_s12, 4  ;;  %s16_s15 = sshll.u32 %s475_s14, 4  ;;  %s30_s13 = int_to_ptr.vmem [resolvable:$true] %s29_s13  ;;  %s500_s15 = int_to_ptr.vmem [resolvable:$true] %s16_s15 }
   0x4   :  { %s380_s18 = scalar_lea.hbm %s866_s1, 512 }
   0x5   :  { %p381_p0 = scmp.ne.s32.totalorder %s866_s1, %s380_s18  ;;  %p384_p1 = scmp.lt.u32.totalorder %s380_s18, %s866_s1 }
   0x7   :  { %p386_p2 = pnand %p384_p1, %p381_p0 }
   0x9   :  { %389 = shalt.err (!%p386_p2)
}
   0xa   :  { %s390_s23 = scalar_lea.vmem %s30_s13, 512  ;;  %p395_p4 = scmp.lt.s32.totalorder %s30_s13, %s30_s13 }
   0xb   :  { %p391_p3 = scmp.ne.s32.totalorder %s30_s13, %s390_s23  ;;  %p396_p5 = scmp.lt.s32.totalorder %s390_s23, %s390_s23 }
   0xd   :  { %p397_p6 = por %p396_p5, %p395_p4 }
   0xf   :  { %p398_p7 = pnand %p397_p6, %p391_p3 }
  0x11   :  { %401 = shalt.err (!%p398_p7)
}
  0x12   :  { %32 = dma.hbm_to_vmem [thread:$0]  %s866_s1, 512, %s30_s13, [#allocation6]  }
  0x13   :  { %s402_s28 = scalar_lea.hbm %s865_s0, 1536 }
  0x14   :  { %p403_p8 = scmp.ne.s32.totalorder %s865_s0, %s402_s28  ;;  %p406_p9 = scmp.lt.u32.totalorder %s402_s28, %s865_s0 }
  0x16   :  { %p408_p10 = pnand %p406_p9, %p403_p8 }
  0x18   :  { %411 = shalt.err (!%p408_p10)
}
  0x19   :  { %s412_s6 = scalar_lea.vmem %s500_s15, 1536  ;;  %p417_p12 = scmp.lt.s32.totalorder %s500_s15, %s500_s15 }
  0x1a   :  { %p413_p11 = scmp.ne.s32.totalorder %s500_s15, %s412_s6  ;;  %p418_p13 = scmp.lt.s32.totalorder %s412_s6, %s412_s6 }
  0x1c   :  { %p419_p0 = por %p418_p13, %p417_p12 }
  0x1e   :  { %p420_p1 = pnand %p419_p0, %p413_p11 }
  0x20   :  { %423 = shalt.err (!%p420_p1)
}
  0x21   :  { %s476_s1 = smov 512   ;;  %s477_s7 = smov 32  }
  0x22   :  { %22 = dma.hbm_to_vmem [thread:$0]  %s865_s0, 1536, %s500_s15, [#allocation3], %s476_s1, %s476_s1, %s477_s7  }
  0x23   :  { %s478_s10 = smov [#allocation7]   ;;  %s424_s14 = scalar_lea.hbm %s867_s2, 512 }
  0x24   :  { %s39_s11 = sshll.u32 %s478_s10, 4  ;;  %p425_p2 = scmp.ne.s32.totalorder %s867_s2, %s424_s14  ;;  %s40_s11 = int_to_ptr.vmem [resolvable:$true] %s39_s11 }
  0x25   :  { %p428_p3 = scmp.lt.u32.totalorder %s424_s14, %s867_s2 }
  0x27   :  { %p430_p4 = pnand %p428_p3, %p425_p2 }
  0x29   :  { %433 = shalt.err (!%p430_p4)
}
  0x2a   :  { %s434_s20 = scalar_lea.vmem %s40_s11, 512  ;;  %p439_p6 = scmp.lt.s32.totalorder %s40_s11, %s40_s11 }
  0x2b   :  { %p435_p5 = scmp.ne.s32.totalorder %s40_s11, %s434_s20  ;;  %p440_p7 = scmp.lt.s32.totalorder %s434_s20, %s434_s20 }
  0x2d   :  { %p441_p8 = por %p440_p7, %p439_p6 }
  0x2f   :  { %p442_p9 = pnand %p441_p8, %p435_p5 }
  0x31   :  { %445 = shalt.err (!%p442_p9)
}
  0x32   :  { %42 = dma.hbm_to_vmem [thread:$0]  %s867_s2, 512, %s40_s11, [#allocation6]  }
  0x33   :  { %468 = dma.done.wait [#allocation3], 1536  }
  0x34   :  { %469 = vsyncadd [#allocation3], 4294965760 }
  0x35   :  { %470 = dma.done.wait [#allocation6], 1024  }
  0x36   :  { %471 = vsyncadd [#allocation6], 4294966272  ;;  %v52_v0 = vld [vmem:[#allocation5] sm:$0xff]  ;;  %v53_v12 = vld [vmem:[#allocation5 + $0x8] sm:$0xff]  ;;  %v893_v35 = vmov 0  ;;  %v895_v42 = vmov 0 }
  0x37   :  { %v112_v1 = vld [vmem:[#allocation7] sm:$0xff]  ;;  %v546_v3 = vmul.f32 0.95, %v52_v0  ;;  %v579_v20 = vmul.f32 0.95, %v53_v12  ;;  %v113_v21 = vld [vmem:[#allocation7 + $0x8] sm:$0xff] }
  0x38   :  { %v124_v2 = vld [vmem:[#allocation2] sm:$0xff]  ;;  %v116_v4 = vmul.f32 0.05, %v112_v1  ;;  %v125_v22 = vld [vmem:[#allocation2 + $0x8] sm:$0xff]  ;;  %v117_v24 = vmul.f32 0.05, %v113_v21 }
  0x39   :  { %v128_v5 = vmul.f32 0.7625, %v124_v2  ;;  %v140_v6 = vmul.f32 0.525, %v124_v2  ;;  %v152_v7 = vmul.f32 0.2875, %v124_v2 }
  0x3a   :  { %v164_v8 = vmul.f32 0.05, %v124_v2  ;;  %vm60_vm0 = vcmp.gt.f32.partialorder %v546_v3, 0.2  ;;  %vm64_vm1 = vcmp.le.f32.partialorder %v546_v3, 0.25  ;;  %vm76_vm3 = vcmp.le.f32.partialorder %v546_v3, 0.5 }
  0x3b   :  { %vm72_vm2 = vcmp.gt.f32.partialorder %v546_v3, 0.4  ;;  %vm552_vm4 = vmand %vm60_vm0, %vm64_vm1  ;;  %vm84_vm5 = vcmp.gt.f32.partialorder %v546_v3, 0.6  ;;  %vm88_vm6 = vcmp.le.f32.partialorder %v546_v3, 0.75  ;;  %vm100_vm8 = vcmp.le.f32.partialorder %v546_v3, 1.0 }
  0x3c   :  { %vm870_vm7 = vcmp.gt.f32.partialorder %v546_v3, 0.8  ;;  %vm560_vm9 = vmand %vm72_vm2, %vm76_vm3  ;;  %vm869_vm10 = vcmp.gt.f32.partialorder %v546_v3, 0.3  ;;  %v132_v11 = vadd.f32 0.154375, %v128_v5 }
  0x3d   :  { %vm565_vm11 = vmand %vm84_vm5, %vm88_vm6  ;;  %v144_v14 = vadd.f32 0.16625, %v140_v6  ;;  %v156_v15 = vadd.f32 0.249375, %v152_v7  ;;  %v168_v16 = vadd.f32 0.1425, %v164_v8 }
  0x3e   :  { %vm571_vm12 = vmand %vm870_vm7, %vm100_vm8  ;;  %v575_v18 = vadd.f32 1.0, %v116_v4  ;;  %v136_v19 = vsel %vm552_vm4, %v132_v11, %v124_v2  ;;  %v129_v25 = vmul.f32 0.7625, %v125_v22  ;;  %v141_v26 = vmul.f32 0.525, %v125_v22  ;;  %v54_v29 = vld [vmem:[#allocation5 + $0x10] sm:$0xff] }
  0x3f   :  { %v148_v23 = vsel %vm560_vm9, %v144_v14, %v136_v19  ;;  %vm61_vm13 = vcmp.gt.f32.partialorder %v579_v20, 0.2  ;;  %vm65_vm14 = vcmp.le.f32.partialorder %v579_v20, 0.25  ;;  %vm73_vm15 = vcmp.gt.f32.partialorder %v579_v20, 0.4  ;;  %v114_v32 = vld [vmem:[#allocation7 + $0x10] sm:$0xff] }
  0x40   :  { %v160_v27 = vsel %vm565_vm11, %v156_v15, %v148_v23  ;;  %vm77_vm0 = vcmp.le.f32.partialorder %v579_v20, 0.5  ;;  %vm85_vm1 = vcmp.gt.f32.partialorder %v579_v20, 0.6  ;;  %vm89_vm2 = vcmp.le.f32.partialorder %v579_v20, 0.75  ;;  %vm595_vm3 = vmand %vm61_vm13, %vm65_vm14  ;;  %v126_v33 = vld [vmem:[#allocation2 + $0x10] sm:$0xff]  ;;  %v55_v54 = vld [vmem:[#allocation5 + $0x18] sm:$0xff] }
  0x41   :  { %v172_v28 = vsel %vm571_vm12, %v168_v16, %v160_v27  ;;  %vm871_vm5 = vcmp.gt.f32.partialorder %v579_v20, 0.8  ;;  %vm601_vm6 = vmand %vm73_vm15, %vm77_vm0  ;;  %vm101_vm8 = vcmp.le.f32.partialorder %v579_v20, 1.0  ;;  %v133_v36 = vadd.f32 0.154375, %v129_v25  ;;  %v115_v55 = vld [vmem:[#allocation7 + $0x18] sm:$0xff] }
  0x42   :  { %v176_v30 = vsel %vm870_vm7, 0.05, %v172_v28  ;;  %v894_v35 = vsel %vm601_vm6, 4294967295, %v893_v35  ;;  %v145_v37 = vadd.f32 0.16625, %v141_v26  ;;  %vm614_vm13 = vmand %vm85_vm1, %vm89_vm2  ;;  %v897_v47 = vmov 0 }
  0x43   :  { %v180_v34 = vmul.f32 %v176_v30, %v575_v18  ;;  %v153_v38 = vmul.f32 0.2875, %v125_v22  ;;  %v165_v39 = vmul.f32 0.05, %v125_v22  ;;  %v606_v40 = vmul.f32 0.95, %v54_v29  ;;  %vm622_vm14 = vmand %vm871_vm5, %vm101_vm8 }
  0x44   :  { %v896_v42 = vsel %vm614_vm13, 4294967295, %v895_v42  ;;  %v137_v43 = vsel %vm595_vm3, %v133_v36, %v125_v22  ;;  %v118_v44 = vmul.f32 0.05, %v114_v32  ;;  %v130_v45 = vmul.f32 0.7625, %v126_v33  ;;  %v127_v58 = vld [vmem:[#allocation2 + $0x18] sm:$0xff] }
  0x45   :  { %v184_v41 = vsel %vm869_vm10, %v180_v34, %v176_v30  ;;  %v898_v47 = vsel %vm622_vm14, 4294967295, %v897_v47  ;;  %v149_v48 = vsel %vm601_vm6, %v145_v37, %v137_v43  ;;  %v157_v49 = vadd.f32 0.249375, %v153_v38  ;;  %v201_v25 = vld [vmem:[#allocation2 + $0x20] sm:$0xff]  ;;  %v282_v31 = vld [vmem:[#allocation2 + $0x58] sm:$0xff]  ;;  %s479_s2 = smov [#allocation8]  }
  0x46   :  { %v188_v46 = vmax.f32 %v184_v41, 0.0  ;;  %v169_v50 = vadd.f32 0.1425, %v165_v39  ;;  %v629_v51 = vadd.f32 1.0, %v117_v24  ;;  %vm62_vm0 = vcmp.gt.f32.partialorder %v606_v40, 0.2 }
  0x47   :  { %vm66_vm1 = vcmp.le.f32.partialorder %v606_v40, 0.25  ;;  %v161_v53 = vsel %vm614_vm13, %v157_v49, %v149_v48  ;;  %v899_v57 = vmov 0  ;;  %vm86_vm7 = vcmp.gt.f32.partialorder %v606_v40, 0.6  ;;  %v202_v39 = vld [vmem:[#allocation2 + $0x28] sm:$0xff]  ;;  %s361_s21 = sshll.u32 %s479_s2, 4  ;;  %s362_s21 = int_to_ptr.vmem [resolvable:$true] %s361_s21 }
  0x48   :  { %v192_v52 = vmin.f32 %v188_v46, 1.0  ;;  %v173_v56 = vsel %vm622_vm14, %v169_v50, %v161_v53  ;;  %vm639_vm10 = vmand %vm62_vm0, %vm66_vm1  ;;  %vm90_vm15 = vcmp.le.f32.partialorder %v606_v40, 0.75  ;;  %vm901_vm2 = vcmp.gt.f32.partialorder %v579_v20, 0.8  ;;  %s446_s22 = scalar_lea.vmem %s362_s21, 1536  ;;  %p451_p11 = scmp.lt.s32.totalorder %s362_s21, %s362_s21 }
  0x49   :  { %v900_v57 = vsel %vm639_vm10, 4294967295, %v899_v57  ;;  %v177_v59 = vsel %vm901_vm2, 0.05, %v173_v56  ;;  %vm102_vm8 = vcmp.le.f32.partialorder %v606_v40, 1.0  ;;  %v650_v60 = vadd.f32 1.0, %v118_v44  ;;  %vm671_vm13 = vmand %vm86_vm7, %vm90_vm15  ;;  %p447_p10 = scmp.ne.s32.totalorder %s362_s21, %s446_s22  ;;  %p452_p12 = scmp.lt.s32.totalorder %s446_s22, %s446_s22 }
  0x4a   :  { %196 = vst [vmem:[#allocation8] sm:$0xff] %v192_v52  ;;  %v134_v61 = vadd.f32 0.154375, %v130_v45  ;;  %v181_v62 = vmul.f32 %v177_v59, %v629_v51  ;;  %v142_v63 = vmul.f32 0.525, %v126_v33  ;;  %vm902_vm0 = vcmp.le.f32.partialorder %v606_v40, 0.5 }
  0x4b   :  { %v154_v0 = vmul.f32 0.2875, %v126_v33  ;;  %v166_v1 = vmul.f32 0.05, %v126_v33  ;;  %vm903_vm1 = vcmp.gt.f32.partialorder %v606_v40, 0.4  ;;  %p453_p13 = por %p452_p12, %p451_p11 }
  0x4c   :  { %vm657_vm5 = vmand %vm903_vm1, %vm902_vm0  ;;  %v904_v2 = vmov 0  ;;  %v138_v4 = vsel %vm639_vm10, %v134_v61, %v126_v33  ;;  %v663_v5 = vmul.f32 0.95, %v55_v54  ;;  %v119_v6 = vmul.f32 0.05, %v115_v55 }
  0x4d   :  { %v905_v2 = vsel %vm657_vm5, 4294967295, %v904_v2  ;;  %v131_v7 = vmul.f32 0.7625, %v127_v58  ;;  %vm906_vm2 = vcmp.gt.f32.partialorder %v579_v20, 0.3  ;;  %v912_v24 = vmov 0  ;;  %p454_p0 = pnand %p453_p13, %p447_p10 }
  0x4e   :  { %v185_v8 = vsel %vm906_vm2, %v181_v62, %v177_v59  ;;  %v146_v12 = vadd.f32 0.16625, %v142_v63  ;;  %v158_v14 = vadd.f32 0.249375, %v154_v0  ;;  %v170_v15 = vadd.f32 0.1425, %v166_v1 }
  0x4f   :  { %v189_v16 = vmax.f32 %v185_v8, 0.0  ;;  %vm909_vm0 = vcmp.gt.f32.partialorder %v606_v40, 0.8  ;;  %vm63_vm2 = vcmp.gt.f32.partialorder %v663_v5, 0.2  ;;  %vm67_vm10 = vcmp.le.f32.partialorder %v663_v5, 0.25 }
  0x50   :  { %vm679_vm1 = vmand %vm909_vm0, %vm102_vm8  ;;  %v150_v21 = vsel %vm657_vm5, %v146_v12, %v138_v4  ;;  %vm79_vm15 = vcmp.le.f32.partialorder %v663_v5, 0.5  ;;  %vm103_vm7 = vcmp.le.f32.partialorder %v663_v5, 1.0  ;;  %v702_v27 = vadd.f32 1.0, %v119_v6  ;;  %v203_v6 = vld [vmem:[#allocation2 + $0x30] sm:$0xff] }
  0x51   :  { %v193_v22 = vmin.f32 %v189_v16, 1.0  ;;  %v162_v23 = vsel %vm671_vm13, %v158_v14, %v150_v21  ;;  %vm693_vm8 = vmand %vm63_vm2, %vm67_vm10  ;;  %v135_v28 = vadd.f32 0.154375, %v131_v7  ;;  %v143_v30 = vmul.f32 0.525, %v127_v58 }
  0x52   :  { %v913_v24 = vsel %vm693_vm8, 4294967295, %v912_v24  ;;  %v174_v26 = vsel %vm679_vm1, %v170_v15, %v162_v23  ;;  %vm914_vm6 = vmmov %vm909_vm0  ;;  %v155_v32 = vmul.f32 0.2875, %v127_v58  ;;  %vm915_vm10 = vcmp.gt.f32.partialorder %v663_v5, 0.4 }
  0x53   :  { %197 = vst [vmem:[#allocation8 + $0x8] sm:$0xff] %v193_v22  ;;  %v178_v29 = vsel %vm914_vm6, 0.05, %v174_v26  ;;  %vm711_vm2 = vmand %vm915_vm10, %vm79_vm15  ;;  %v139_v36 = vsel %vm693_vm8, %v135_v28, %v127_v58  ;;  %v167_v37 = vmul.f32 0.05, %v127_v58  ;;  %vm918_vm6 = vcmp.le.f32.partialorder %v663_v5, 0.75 }
  0x54   :  { %v182_v33 = vmul.f32 %v178_v29, %v650_v60  ;;  %v205_v38 = vmul.f32 0.7625, %v201_v25  ;;  %vm919_vm14 = vcmp.gt.f32.partialorder %v663_v5, 0.6  ;;  %v147_v43 = vadd.f32 0.16625, %v143_v30 }
  0x55   :  { %vm721_vm0 = vmand %vm919_vm14, %vm918_vm6  ;;  %v159_v44 = vadd.f32 0.249375, %v155_v32  ;;  %v217_v45 = vmul.f32 0.525, %v201_v25  ;;  %vm922_vm15 = vcmp.gt.f32.partialorder %v606_v40, 0.3 }
  0x56   :  { %v186_v46 = vsel %vm922_vm15, %v182_v33, %v178_v29  ;;  %vm923_vm10 = vcmp.gt.f32.partialorder %v663_v5, 0.8  ;;  %v171_v49 = vadd.f32 0.1425, %v167_v37  ;;  %v209_v50 = vadd.f32 0.095, %v205_v38 }
  0x57   :  { %vm731_vm8 = vmand %vm923_vm10, %vm103_vm7  ;;  %v229_v52 = vmul.f32 0.2875, %v201_v25  ;;  %v190_v53 = vmax.f32 %v186_v46, 0.0  ;;  %v151_v54 = vsel %vm711_vm2, %v147_v43, %v139_v36  ;;  %v221_v55 = vadd.f32 0.095, %v217_v45 }
  0x58   :  { %v241_v56 = vmul.f32 0.05, %v201_v25  ;;  %v163_v58 = vsel %vm721_vm0, %v159_v44, %v151_v54  ;;  %v213_v59 = vsel %vm552_vm4, %v209_v50, %v201_v25  ;;  %v206_v62 = vmul.f32 0.7625, %v202_v39  ;;  %vm926_vm14 = vmmov %vm923_vm10 }
  0x59   :  { %v233_v61 = vadd.f32 0.1425, %v229_v52  ;;  %v194_v63 = vmin.f32 %v190_v53, 1.0  ;;  %v175_v0 = vsel %vm731_vm8, %v171_v49, %v163_v58  ;;  %v225_v1 = vsel %vm560_vm9, %v221_v55, %v213_v59  ;;  %v204_v49 = vld [vmem:[#allocation2 + $0x38] sm:$0xff]  ;;  %v279_v55 = vld [vmem:[#allocation2 + $0x40] sm:$0xff] }
  0x5a   :  { %v245_v4 = vadd.f32 0.095, %v241_v56  ;;  %v179_v7 = vsel %vm926_vm14, 0.05, %v175_v0  ;;  %v210_v12 = vadd.f32 0.095, %v206_v62  ;;  %vm929_vm15 = vnez %v894_v35 }
  0x5b   :  { %v237_v8 = vsel %vm565_vm11, %v233_v61, %v225_v1  ;;  %v218_v14 = vmul.f32 0.525, %v202_v39  ;;  %198 = vst [vmem:[#allocation8 + $0x10] sm:$0xff] %v194_v63  ;;  %v183_v15 = vmul.f32 %v179_v7, %v702_v27  ;;  %v230_v21 = vmul.f32 0.2875, %v202_v39 }
  0x5c   :  { %v249_v16 = vsel %vm571_vm12, %v245_v4, %v237_v8  ;;  %v242_v22 = vmul.f32 0.05, %v202_v39  ;;  %vm927_vm7 = vcmp.gt.f32.partialorder %v546_v3, 0.8  ;;  %v214_v25 = vsel %vm595_vm3, %v210_v12, %v202_v39 }
  0x5d   :  { %v253_v23 = vsel %vm927_vm7, 0.05, %v249_v16  ;;  %v222_v26 = vadd.f32 0.095, %v218_v14  ;;  %v207_v28 = vmul.f32 0.7625, %v203_v6  ;;  %vm931_vm14 = vnez %v896_v42 }
  0x5e   :  { %vm928_vm6 = vcmp.gt.f32.partialorder %v663_v5, 0.3  ;;  %v257_v30 = vmul.f32 %v253_v23, %v575_v18  ;;  %v234_v32 = vadd.f32 0.1425, %v230_v21  ;;  %v246_v33 = vadd.f32 0.095, %v242_v22 }
  0x5f   :  { %v187_v29 = vsel %vm928_vm6, %v183_v15, %v179_v7  ;;  %v226_v37 = vsel %vm929_vm15, %v222_v26, %v214_v25  ;;  %v211_v38 = vadd.f32 0.095, %v207_v28  ;;  %v219_v43 = vmul.f32 0.525, %v203_v6  ;;  %v280_v25 = vld [vmem:[#allocation2 + $0x48] sm:$0xff] }
  0x60   :  { %v191_v36 = vmax.f32 %v187_v29, 0.0  ;;  %vm930_vm10 = vcmp.gt.f32.partialorder %v546_v3, 0.3  ;;  %v238_v39 = vsel %vm931_vm14, %v234_v32, %v226_v37  ;;  %v231_v45 = vmul.f32 0.2875, %v203_v6 }
  0x61   :  { %v261_v44 = vsel %vm930_vm10, %v257_v30, %v253_v23  ;;  %v243_v46 = vmul.f32 0.05, %v203_v6  ;;  %vm932_vm7 = vnez %v898_v47  ;;  %vm933_vm6 = vnez %v900_v57 }
  0x62   :  { %v195_v50 = vmin.f32 %v191_v36, 1.0  ;;  %v265_v52 = vmax.f32 %v261_v44, 0.0  ;;  %v250_v53 = vsel %vm932_vm7, %v246_v33, %v238_v39  ;;  %v215_v54 = vsel %vm933_vm6, %v211_v38, %v203_v6 }
  0x63   :  { %vm934_vm15 = vcmp.gt.f32.partialorder %v579_v20, 0.8  ;;  %v223_v58 = vadd.f32 0.095, %v219_v43  ;;  %v235_v59 = vadd.f32 0.1425, %v231_v45 }
  0x64   :  { %v254_v56 = vsel %vm934_vm15, 0.05, %v250_v53  ;;  %199 = vst [vmem:[#allocation8 + $0x18] sm:$0xff] %v195_v50  ;;  %v269_v61 = vmin.f32 %v265_v52, 1.0  ;;  %v247_v63 = vadd.f32 0.095, %v243_v46 }
  0x65   :  { %v258_v62 = vmul.f32 %v254_v56, %v629_v51  ;;  %v208_v0 = vmul.f32 0.7625, %v204_v49  ;;  %v227_v1 = vsel %vm657_vm5, %v223_v58, %v215_v54  ;;  %v220_v4 = vmul.f32 0.525, %v204_v49 }
  0x66   :  { %v232_v7 = vmul.f32 0.2875, %v204_v49  ;;  %v244_v8 = vmul.f32 0.05, %v204_v49  ;;  %274 = vst [vmem:[#allocation8 + $0x20] sm:$0xff] %v269_v61  ;;  %v239_v12 = vsel %vm671_vm13, %v235_v59, %v227_v1  ;;  %vm937_vm5 = vnez %v913_v24 }
  0x67   :  { %vm935_vm10 = vcmp.gt.f32.partialorder %v579_v20, 0.3  ;;  %v212_v14 = vadd.f32 0.095, %v208_v0  ;;  %v283_v15 = vmul.f32 0.7625, %v279_v55  ;;  %v251_v21 = vsel %vm679_vm1, %v247_v63, %v239_v12 }
  0x68   :  { %v262_v6 = vsel %vm935_vm10, %v258_v62, %v254_v56  ;;  %v224_v22 = vadd.f32 0.095, %v220_v4  ;;  %v236_v23 = vadd.f32 0.1425, %v232_v7  ;;  %vm936_vm15 = vcmp.gt.f32.partialorder %v606_v40, 0.8 }
  0x69   :  { %v266_v16 = vmax.f32 %v262_v6, 0.0  ;;  %v255_v26 = vsel %vm936_vm15, 0.05, %v251_v21  ;;  %v216_v28 = vsel %vm937_vm5, %v212_v14, %v204_v49  ;;  %v248_v29 = vadd.f32 0.095, %v244_v8  ;;  %v281_v0 = vld [vmem:[#allocation2 + $0x50] sm:$0xff] }
  0x6a   :  { %v287_v30 = vadd.f32 0.059375, %v283_v15  ;;  %v259_v33 = vmul.f32 %v255_v26, %v650_v60  ;;  %v228_v36 = vsel %vm711_vm2, %v224_v22, %v216_v28  ;;  %v295_v37 = vmul.f32 0.525, %v279_v55 }
  0x6b   :  { %v270_v32 = vmin.f32 %v266_v16, 1.0  ;;  %v240_v38 = vsel %vm721_vm0, %v236_v23, %v228_v36  ;;  %v307_v44 = vmul.f32 0.2875, %v279_v55  ;;  %v319_v39 = vmul.f32 0.05, %v279_v55 }
  0x6c   :  { %v291_v43 = vsel %vm552_vm4, %v287_v30, %v279_v55  ;;  %vm938_vm10 = vcmp.gt.f32.partialorder %v606_v40, 0.3  ;;  %v252_v46 = vsel %vm731_vm8, %v248_v29, %v240_v38  ;;  %v299_v49 = vadd.f32 0.07125, %v295_v37 }
  0x6d   :  { %275 = vst [vmem:[#allocation8 + $0x28] sm:$0xff] %v270_v32  ;;  %v263_v45 = vsel %vm938_vm10, %v259_v33, %v255_v26  ;;  %v284_v50 = vmul.f32 0.7625, %v280_v25  ;;  %vm939_vm15 = vcmp.gt.f32.partialorder %v663_v5, 0.8 }
  0x6e   :  { %v267_v52 = vmax.f32 %v263_v45, 0.0  ;;  %v256_v53 = vsel %vm939_vm15, 0.05, %v252_v46  ;;  %v311_v54 = vadd.f32 0.106875, %v307_v44  ;;  %v303_v9 = vsel %vm560_vm9, %v299_v49, %v291_v43 }
  0x6f   :  { %v260_v56 = vmul.f32 %v256_v53, %v702_v27  ;;  %v323_v55 = vadd.f32 0.095, %v319_v39  ;;  %v288_v58 = vadd.f32 0.059375, %v284_v50  ;;  %v296_v62 = vmul.f32 0.525, %v280_v25 }
  0x70   :  { %v271_v59 = vmin.f32 %v267_v52, 1.0  ;;  %v315_v61 = vsel %vm565_vm11, %v311_v54, %v303_v9  ;;  %v308_v63 = vmul.f32 0.2875, %v280_v25  ;;  %vm940_vm4 = vcmp.gt.f32.partialorder %v663_v5, 0.3 }
  0x71   :  { %v264_v1 = vsel %vm940_vm4, %v260_v56, %v256_v53  ;;  %v327_v4 = vsel %vm571_vm12, %v323_v55, %v315_v61  ;;  %v292_v7 = vsel %vm595_vm3, %v288_v58, %v280_v25  ;;  %v320_v10 = vmul.f32 0.05, %v280_v25 }
  0x72   :  { %276 = vst [vmem:[#allocation8 + $0x30] sm:$0xff] %v271_v59  ;;  %v268_v8 = vmax.f32 %v264_v1, 0.0  ;;  %vm941_vm9 = vcmp.gt.f32.partialorder %v546_v3, 0.8  ;;  %v300_v13 = vadd.f32 0.07125, %v296_v62  ;;  %vm942_vm11 = vnez %v894_v35 }
  0x73   :  { %v331_v6 = vsel %vm941_vm9, 0.05, %v327_v4  ;;  %v312_v14 = vadd.f32 0.106875, %v308_v63  ;;  %v324_v15 = vadd.f32 0.095, %v320_v10 }
  0x74   :  { %v335_v12 = vmul.f32 %v331_v6, %v575_v18  ;;  %v285_v16 = vmul.f32 0.7625, %v281_v0  ;;  %v272_v21 = vmin.f32 %v268_v8, 1.0  ;;  %v304_v17 = vsel %vm942_vm11, %v300_v13, %v292_v7 }
  0x75   :  { %v297_v22 = vmul.f32 0.525, %v281_v0  ;;  %v309_v23 = vmul.f32 0.2875, %v281_v0  ;;  %vm943_vm12 = vcmp.gt.f32.partialorder %v546_v3, 0.3  ;;  %v316_v26 = vsel %vm931_vm14, %v312_v14, %v304_v17 }
  0x76   :  { %v339_v25 = vsel %vm943_vm12, %v335_v12, %v331_v6  ;;  %v289_v28 = vadd.f32 0.059375, %v285_v16  ;;  %v321_v29 = vmul.f32 0.05, %v281_v0  ;;  %277 = vst [vmem:[#allocation8 + $0x38] sm:$0xff] %v272_v21  ;;  %v328_v30 = vsel %vm932_vm7, %v324_v15, %v316_v26 }
  0x77   :  { %v343_v18 = vmax.f32 %v339_v25, 0.0  ;;  %v301_v32 = vadd.f32 0.07125, %v297_v22  ;;  %v313_v33 = vadd.f32 0.106875, %v309_v23  ;;  %vm945_vm14 = vnez %v905_v2 }
  0x78   :  { %vm944_vm3 = vcmp.gt.f32.partialorder %v579_v20, 0.8  ;;  %v293_v36 = vsel %vm933_vm6, %v289_v28, %v281_v0  ;;  %v325_v3 = vadd.f32 0.095, %v321_v29  ;;  %v286_v37 = vmul.f32 0.7625, %v282_v31 }
  0x79   :  { %v332_v35 = vsel %vm944_vm3, 0.05, %v328_v30  ;;  %v347_v38 = vmin.f32 %v343_v18, 1.0  ;;  %v305_v43 = vsel %vm945_vm14, %v301_v32, %v293_v36  ;;  %v298_v44 = vmul.f32 0.525, %v282_v31 }
  0x7a   :  { %v336_v42 = vmul.f32 %v332_v35, %v629_v51  ;;  %v317_v47 = vsel %vm671_vm13, %v313_v33, %v305_v43  ;;  %v290_v39 = vadd.f32 0.059375, %v286_v37  ;;  %v310_v45 = vmul.f32 0.2875, %v282_v31  ;;  %vm948_vm13 = vmmov %vm938_vm10 }
  0x7b   :  { %v322_v46 = vmul.f32 0.05, %v282_v31  ;;  %352 = vst [vmem:[#allocation8 + $0x40] sm:$0xff] %v347_v38  ;;  %vm946_vm7 = vcmp.gt.f32.partialorder %v579_v20, 0.3  ;;  %v329_v49 = vsel %vm679_vm1, %v325_v3, %v317_v47  ;;  %vm950_vm1 = vmmov %vm940_vm4 }
  0x7c   :  { %v340_v57 = vsel %vm946_vm7, %v336_v42, %v332_v35  ;;  %v302_v50 = vadd.f32 0.07125, %v298_v44  ;;  %vm947_vm6 = vcmp.gt.f32.partialorder %v606_v40, 0.8  ;;  %v294_v2 = vsel %vm937_vm5, %v290_v39, %v282_v31  ;;  %vm949_vm5 = vmmov %vm939_vm15 }
  0x7d   :  { %v344_v52 = vmax.f32 %v340_v57, 0.0  ;;  %v333_v51 = vsel %vm947_vm6, 0.05, %v329_v49  ;;  %v314_v11 = vadd.f32 0.106875, %v310_v45 }
  0x7e   :  { %v337_v53 = vmul.f32 %v333_v51, %v650_v60  ;;  %v306_v54 = vsel %vm711_vm2, %v302_v50, %v294_v2  ;;  %v326_v56 = vadd.f32 0.095, %v322_v46 }
  0x7f   :  { %v348_v20 = vmin.f32 %v344_v52, 1.0  ;;  %v318_v19 = vsel %vm721_vm0, %v314_v11, %v306_v54 }
  0x80   :  { %v341_v9 = vsel %vm948_vm13, %v337_v53, %v333_v51  ;;  %v330_v55 = vsel %vm731_vm8, %v326_v56, %v318_v19 }
  0x81   :  { %353 = vst [vmem:[#allocation8 + $0x48] sm:$0xff] %v348_v20  ;;  %v345_v24 = vmax.f32 %v341_v9, 0.0  ;;  %v334_v58 = vsel %vm949_vm5, 0.05, %v330_v55 }
  0x82   :  { %v338_v60 = vmul.f32 %v334_v58, %v702_v27 }
  0x83   :  { %v349_v34 = vmin.f32 %v345_v24, 1.0 }
  0x84   :  { %v342_v59 = vsel %vm950_vm1, %v338_v60, %v334_v58 }
  0x85   :  { %354 = vst [vmem:[#allocation8 + $0x50] sm:$0xff] %v349_v34  ;;  %v346_v41 = vmax.f32 %v342_v59, 0.0 }
  0x87   :  { %v350_v40 = vmin.f32 %v346_v41, 1.0 }
  0x89   :  { %355 = vst [vmem:[#allocation8 + $0x58] sm:$0xff] %v350_v40 }
  0x8a   :  { %457 = shalt.err (!%p454_p0)
}
  0x8b   :  { %s458_s25 = scalar_lea.hbm %s868_s3, 1536 }
  0x8c   :  { %p459_p1 = scmp.ne.s32.totalorder %s868_s3, %s458_s25  ;;  %p462_p2 = scmp.lt.u32.totalorder %s458_s25, %s868_s3 }
  0x8e   :  { %p464_p3 = pnand %p462_p2, %p459_p1 }
  0x90   :  { %467 = shalt.err (!%p464_p3)
}
  0x91   :  { %367 = dma.vmem_to_hbm [thread:$0]  %s362_s21, 1536, %s868_s3, [#allocation4], %s476_s1, %s476_s1, %s477_s7  }
  0x92   :  { %472 = dma.done.wait [#allocation4], 1536  }
  0x93   :  { %473 = vsyncadd [#allocation4], 4294965760 }
  0x94   :  { %371 = vsyncpa [#allocation3], 1 }
  0x95   :  { %372 = vsyncpa [#allocation6], 1 }
  0x96   :  { %373 = vsyncpa [#allocation4], 1 }

</bundles_post_ra>
